<compile_context>
chip_gen: v7x
topology: tpu7x:2x2x1
jax: 0.10.0
libtpu: 0.0.40
codegen_flags: <defaults>
</compile_context>

<pallas_src>
import numpy as np

import jax
import jax.numpy as jnp
from jax.experimental import pallas as pl
from jax.experimental.pallas import tpu as pltpu


_LANE = 128
_SUBLANE = 8
_NOUT = 2  # real output features of the second Linear


def _round_up(n, m):
    return ((n + m - 1) // m) * m


def _cdiv(a, b):
    return (a + b - 1) // b


def _vmem_capacity_bytes():
    """Physical VMEM per TensorCore; conservative 64 MiB (v7x) if unknown."""
    try:
        cap = getattr(pltpu.get_tpu_info(), "vmem_capacity_bytes", None)
        if cap:
            return int(cap)
    except Exception:
        pass
    return 64 * 1024 * 1024


def _single_buffered_spec(block_shape, index_map):
    """BlockSpec for a grid-constant operand: one VMEM buffer instead of two."""
    return pl.BlockSpec(block_shape, index_map, pipeline_mode=pl.Buffered(1))


# ----------------------------------------------------------------------------
# Kernels
# ----------------------------------------------------------------------------

def _mlp_kernel_resident(x_ref, w1_ref, b1_ref, w2_ref, b2_ref, o_ref):
    # x_ref:  (TM, Dp)       input tile
    # w1_ref: (Dp, Dp)       first weight, (in, out) layout (pre-transposed)
    # b1_ref: (1, Dp)        f32 bias
    # w2_ref: (Dp, NW)       second weight, (in, out) layout, zero-padded
    # b2_ref: (1, NW)        f32 bias, zero-padded
    # o_ref:  (TM, NW)       output tile
    h = jnp.dot(x_ref[...], w1_ref[...], preferred_element_type=jnp.float32)
    h = jnp.tanh(h + b1_ref[...])                              # f32 VPU/EUP
    y = jnp.dot(h.astype(w2_ref.dtype), w2_ref[...],
                preferred_element_type=jnp.float32) + b2_ref[...]
    o_ref[...] = y.astype(o_ref.dtype)


def _mlp_kernel_htiled(x_ref, w1_ref, b1_ref, w2_ref, b2_ref, o_ref, acc_ref):
    # Grid = (batch tiles, hidden chunks).  Per hidden chunk:
    #   h_j = tanh(x @ W1[:, j] + b1[j]);  acc += h_j @ W2[j, :]
    # acc is a (TM, NW) f32 VMEM scratch; init at j==0, finalize at last j.
    j = pl.program_id(1)

    @pl.when(j == 0)
    def _():
        acc_ref[...] = jnp.zeros_like(acc_ref)

    h = jnp.dot(x_ref[...], w1_ref[...], preferred_element_type=jnp.float32)
    h = jnp.tanh(h + b1_ref[...])
    acc_ref[...] += jnp.dot(h.astype(w2_ref.dtype), w2_ref[...],
                            preferred_element_type=jnp.float32)

    @pl.when(j == pl.num_programs(1) - 1)
    def _():
        o_ref[...] = (acc_ref[...] + b2_ref[...]).astype(o_ref.dtype)


# ----------------------------------------------------------------------------
# One-time parameter preparation (hoisted out of the forward pass)
# ----------------------------------------------------------------------------

def prepare_params(w1, b1, w2, b2, *, compute_dtype=jnp.float32):
    """Transpose weights to (in,out) MXU layout and zero-pad to lane multiples.

    Call ONCE at parameter-init / load time; mlp_forward then pays no per-call
    transpose or weight-pad HBM traffic.  compute_dtype=jnp.bfloat16 enables
    the bf16 MXU path (f32 accumulation, f32 bias+tanh kept).
    """
    D = int(w1.shape[1])
    assert w1.shape == (D, D) and b1.shape == (D,)
    assert w2.shape == (_NOUT, D) and b2.shape == (_NOUT,)

    cdt = jnp.dtype(compute_dtype)
    Dp = _round_up(D, _LANE)
    # Narrow (B, 2) output when D is small (writeback would dominate HBM);
    # lane-dense 128-wide output for large D (unmasked vst, negligible extra).
    nout_w = _NOUT if Dp <= 256 else _LANE

    # Padded hidden columns see tanh(0 + 0) = 0 and padded W2 rows/cols are 0,
    # so the extra lanes contribute nothing numerically.
    w1t = jnp.zeros((Dp, Dp), cdt).at[:D, :D].set(w1.T.astype(cdt))
    b1p = jnp.zeros((1, Dp), jnp.float32).at[0, :D].set(b1.astype(jnp.float32))
    w2t = jnp.zeros((Dp, nout_w), cdt).at[:D, :_NOUT].set(w2.T.astype(cdt))
    b2p = jnp.zeros((1, nout_w), jnp.float32).at[0, :_NOUT].set(
        b2.astype(jnp.float32))
    return {"w1t": w1t, "b1p": b1p, "w2t": w2t, "b2p": b2p,
            "D": D, "Dp": Dp, "nout_w": nout_w, "compute_dtype": cdt}


# ----------------------------------------------------------------------------
# Tiling plans
# ----------------------------------------------------------------------------

def _pick_tm(B, cap):
    """Balanced batch tile: minimal padding waste, >=2 grid steps when possible
    (so dimension_semantics=('parallel',) can shard across v7x's 2 TCs)."""
    cap = max(_SUBLANE, (cap // _SUBLANE) * _SUBLANE)
    n_tiles = max(1, _cdiv(B, cap))
    if n_tiles == 1 and B > _SUBLANE:
        n_tiles = 2
    return _round_up(_cdiv(B, n_tiles), _SUBLANE)


def _plan_resident(B, Dp, nout_w, itemsize, vmem_budget, tm_cap):
    """Weight-resident plan; returns (TM, Bp, vmem_need) or None if no fit."""
    # Single-buffered resident weights + f32 biases.
    w_bytes = (Dp * Dp + Dp * nout_w) * itemsize + (Dp + nout_w) * 4
    # Per batch row: dbl-buffered x, dbl-buffered out, f32 hidden h, cast copy.
    per_row = (2 * Dp + 2 * nout_w + Dp) * itemsize + Dp * 4
    avail = vmem_budget - w_bytes
    if avail < _SUBLANE * per_row:
        return None
    tm_fit = ((avail // per_row) // _SUBLANE) * _SUBLANE
    TM = _pick_tm(B, min(tm_cap, tm_fit))
    Bp = _round_up(B, TM)
    return TM, Bp, w_bytes + TM * per_row


def _plan_htiled(B, Dp, nout_w, itemsize, vmem_budget, tm_cap, th=None):
    """Hidden-dim-tiled plan; returns (TM, TH, Bp, vmem_need)."""
    candidates = [t for t in (1024, 512, 256, 128) if Dp % t == 0] or [128]
    if th is not None:
        candidates = [int(th)]
    for TH in candidates:
        # Double-buffered W1 column / W2 row / b1 blocks; single-buffered b2.
        w_bytes = 2 * (Dp * TH + TH * nout_w) * itemsize + 2 * TH * 4 + nout_w * 4
        # Per row: dbl-buffered x, dbl-buffered out, f32 h chunk + cast, f32 acc.
        per_row = (2 * Dp + 2 * nout_w + TH) * itemsize + TH * 4 + nout_w * 4
        avail = vmem_budget - w_bytes
        if avail < _SUBLANE * per_row:
            continue
        tm_fit = ((avail // per_row) // _SUBLANE) * _SUBLANE
        TM = _pick_tm(B, min(tm_cap, tm_fit))
        Bp = _round_up(B, TM)
        return TM, TH, Bp, w_bytes + TM * per_row
    raise ValueError("MLP Pallas kernel: no tiling fits the VMEM budget")


# ----------------------------------------------------------------------------
# pallas_call builders
# ----------------------------------------------------------------------------

def _call_resident(xp, w1t, b1p, w2t, b2p, *, TM, vmem_limit, cost, const_spec):
    Bp, Dp = xp.shape
    nout_w = w2t.shape[1]
    return pl.pallas_call(
        _mlp_kernel_resident,
        out_shape=jax.ShapeDtypeStruct((Bp, nout_w), xp.dtype),
        grid_spec=pltpu.PrefetchScalarGridSpec(
            num_scalar_prefetch=0,
            grid=(Bp // TM,),
            in_specs=[
                pl.BlockSpec((TM, Dp), lambda i: (i, 0)),       # x tile
                const_spec((Dp, Dp), lambda i: (0, 0)),         # W1 (resident)
                const_spec((1, Dp), lambda i: (0, 0)),          # b1
                const_spec((Dp, nout_w), lambda i: (0, 0)),     # W2 (resident)
                const_spec((1, nout_w), lambda i: (0, 0)),      # b2
            ],
            out_specs=pl.BlockSpec((TM, nout_w), lambda i: (i, 0)),
        ),
        compiler_params=pltpu.CompilerParams(
            dimension_semantics=("parallel",),
            vmem_limit_bytes=int(vmem_limit),
        ),
        cost_estimate=cost,
    )(xp, w1t, b1p, w2t, b2p)


def _call_htiled(xp, w1t, b1p, w2t, b2p, *, TM, TH, vmem_limit, cost, const_spec):
    Bp, Dp = xp.shape
    nout_w = w2t.shape[1]
    return pl.pallas_call(
        _mlp_kernel_htiled,
        out_shape=jax.ShapeDtypeStruct((Bp, nout_w), xp.dtype),
        grid_spec=pltpu.PrefetchScalarGridSpec(
            num_scalar_prefetch=0,
            grid=(Bp // TM, Dp // TH),
            in_specs=[
                pl.BlockSpec((TM, Dp), lambda i, j: (i, 0)),     # x tile
                pl.BlockSpec((Dp, TH), lambda i, j: (0, j)),     # W1 columns
                pl.BlockSpec((1, TH), lambda i, j: (0, j)),      # b1 chunk
                pl.BlockSpec((TH, nout_w), lambda i, j: (j, 0)), # W2 rows
                const_spec((1, nout_w), lambda i, j: (0, 0)),    # b2
            ],
            out_specs=pl.BlockSpec((TM, nout_w), lambda i, j: (i, 0)),
            scratch_shapes=[pltpu.VMEM((TM, nout_w), jnp.float32)],
        ),
        compiler_params=pltpu.CompilerParams(
            dimension_semantics=("parallel", "arbitrary"),
            vmem_limit_bytes=int(vmem_limit),
        ),
        cost_estimate=cost,
    )(xp, w1t, b1p, w2t, b2p)


# ----------------------------------------------------------------------------
# Forward pass
# ----------------------------------------------------------------------------

def mlp_forward(x, params, *, tm=1024, force_hidden_tiling=False, hidden_tile=None):
    """x: (B, ...) -> flattened to (B, D); returns (B, 2) like the nn.Module."""
    B = x.shape[0]
    x2d = x.reshape(B, -1)                                   # x.view(x.size(0), -1)
    D, Dp, nout_w = params["D"], params["Dp"], params["nout_w"]
    cdt = params["compute_dtype"]
    if x2d.shape[1] != D:
        raise ValueError(f"expected {D} flattened features, got {x2d.shape[1]}")
    if x2d.dtype != cdt:
        x2d = x2d.astype(cdt)
    itemsize = jnp.dtype(cdt).itemsize

    vmem_budget = (_vmem_capacity_bytes() * 85) // 100   # headroom for Mosaic scratch
    tm_cap = max(_SUBLANE, min(int(tm), _round_up(B, _SUBLANE)))

    plan = None if force_hidden_tiling else _plan_resident(
        B, Dp, nout_w, itemsize, vmem_budget, tm_cap)
    if plan is not None:
        TM, Bp, need = plan
        TH = None
    else:
        TM, TH, Bp, need = _plan_htiled(
            B, Dp, nout_w, itemsize, vmem_budget, tm_cap, th=hidden_tile)

    vmem_limit = int(min(vmem_budget, max(need + need // 4, 32 * 1024 * 1024)))

    # Skip the pad/copy entirely when the shape is already aligned.
    if Bp != B or Dp != D:
        xp = jnp.zeros((Bp, Dp), cdt).at[:B, :D].set(x2d)
    else:
        xp = x2d

    cost = pl.CostEstimate(
        flops=int(2 * Bp * Dp * Dp + 2 * Bp * Dp * nout_w),
        transcendentals=int(Bp * Dp),
        bytes_accessed=int((Bp * Dp + Dp * Dp + Dp * nout_w + Bp * nout_w)
                           * itemsize + (Dp + nout_w) * 4),
    )

    args = (xp, params["w1t"], params["b1p"], params["w2t"], params["b2p"])

    def run(const_spec):
        if TH is None:
            return _call_resident(*args, TM=TM, vmem_limit=vmem_limit,
                                  cost=cost, const_spec=const_spec)
        return _call_htiled(*args, TM=TM, TH=TH, vmem_limit=vmem_limit,
                            cost=cost, const_spec=const_spec)

    try:
        out_padded = run(_single_buffered_spec)     # single-buffered constants
    except Exception:
        # Fallback if this jax/Mosaic build rejects pipeline_mode=pl.Buffered(1):
        # identical math with default double-buffered grid-constant operands.
        out_padded = run(pl.BlockSpec)

    # Drop batch padding and any lane-padded output columns (real Nout = 2).
    return out_padded[:B, :_NOUT]


def init_params(key, data_dimensions):
    """Mirror nn.Linear default init: U(-1/sqrt(fan_in), 1/sqrt(fan_in))."""
    k1, k2, k3, k4 = jax.random.split(key, 4)
    D = data_dimensions
    bound = 1.0 / float(np.sqrt(D))
    w1 = jax.random.uniform(k1, (D, D), jnp.float32, -bound, bound)   # (out, in)
    b1 = jax.random.uniform(k2, (D,), jnp.float32, -bound, bound)
    w2 = jax.random.uniform(k3, (_NOUT, D), jnp.float32, -bound, bound)
    b2 = jax.random.uniform(k4, (_NOUT,), jnp.float32, -bound, bound)
    return w1, b1, w2, b2


if __name__ == "__main__":
    root = jax.random.PRNGKey(0)

    def reference(x, w1, b1, w2, b2):
        # float64 numpy reference (independent of TPU matmul precision modes).
        x2d = np.asarray(x, np.float64).reshape(x.shape[0], -1)
        h = np.tanh(x2d @ np.asarray(w1, np.float64).T + np.asarray(b1, np.float64))
        return h @ np.asarray(w2, np.float64).T + np.asarray(b2, np.float64)

    def expect_close(out, ref, tol):
        out = np.asarray(out, np.float64)
        assert out.shape == ref.shape, (out.shape, ref.shape)
        err = float(np.max(np.abs(out - ref)))
        # Tolerance accommodates MXU matmul pass precision; real layout/semantic
        # bugs produce O(0.1 - 1) errors and are still caught.
        assert err <= tol, f"max abs err {err} > {tol}"

    # Case 1: D=32 (lane-padded to 128), weight-resident path, narrow (B,2) output.
    k1, k2 = jax.random.split(jax.random.fold_in(root, 1))
    x = jax.random.normal(k1, (8, 4, 8), jnp.float32)            # B=8, D=32
    w1, b1, w2, b2 = init_params(k2, 32)
    params = prepare_params(w1, b1, w2, b2)                      # one-time prep
    out = jax.block_until_ready(mlp_forward(x, params))
    expect_close(out, reference(x, w1, b1, w2, b2), 1e-2)

    # Case 2: lane-aligned D=384 (no x pad copy), 2 batch tiles, 128-wide output.
    k1, k2 = jax.random.split(jax.random.fold_in(root, 2))
    x = jax.random.normal(k1, (16, 384), jnp.float32)            # B=16, D=384
    w1, b1, w2, b2 = init_params(k2, 384)
    params = prepare_params(w1, b1, w2, b2)
    out = jax.block_until_ready(mlp_forward(x, params))
    expect_close(out, reference(x, w1, b1, w2, b2), 1e-2)

    # Case 3: hidden-dim-tiled fallback (forced), accumulation over 2 hidden chunks.
    k1, k2 = jax.random.split(jax.random.fold_in(root, 3))
    x = jax.random.normal(k1, (20, 256), jnp.float32)            # B=20, D=256
    w1, b1, w2, b2 = init_params(k2, 256)
    params = prepare_params(w1, b1, w2, b2)
    out = jax.block_until_ready(
        mlp_forward(x, params, force_hidden_tiling=True, hidden_tile=128))
    expect_close(out, reference(x, w1, b1, w2, b2), 1e-2)

    # Case 4: bf16 MXU path (mixed precision option), loose tolerance.
    k1, k2 = jax.random.split(jax.random.fold_in(root, 4))
    x = jax.random.normal(k1, (8, 4, 8), jnp.float32)
    w1, b1, w2, b2 = init_params(k2, 32)
    params_bf16 = prepare_params(w1, b1, w2, b2, compute_dtype=jnp.bfloat16)
    out = jax.block_until_ready(mlp_forward(x, params_bf16))
    expect_close(out, reference(x, w1, b1, w2, b2), 1e-1)

    print("KERNEL_OK")
</pallas_src>

<mosaic_0001>
module attributes {stable_mosaic.version = 11 : i64} {
  func.func @_mlp_kernel_resident(%arg0: i32, %arg1: memref<8x128xf32, #tpu.memory_space<vmem>>, %arg2: memref<128x128xf32, #tpu.memory_space<vmem>>, %arg3: memref<1x128xf32, #tpu.memory_space<vmem>>, %arg4: memref<128x2xf32, #tpu.memory_space<vmem>>, %arg5: memref<1x2xf32, #tpu.memory_space<vmem>>, %arg6: memref<8x2xf32, #tpu.memory_space<vmem>>) attributes {dimension_semantics = [#tpu.dimension_semantics<parallel>], iteration_bounds = array<i64: 1>, scalar_prefetch = 0 : i64, scratch_operands = 0 : i64, tpu.core_type = #tpu.core_type<tc>, window_params = [{transform_indices = @transform_0, window_bounds = array<i64: 8, 128>}, {pipeline_mode = #tpu.pipeline_mode<synchronous>, transform_indices = @transform_1, window_bounds = array<i64: 128, 128>}, {pipeline_mode = #tpu.pipeline_mode<synchronous>, transform_indices = @transform_2, window_bounds = array<i64: 1, 128>}, {pipeline_mode = #tpu.pipeline_mode<synchronous>, transform_indices = @transform_3, window_bounds = array<i64: 128, 2>}, {pipeline_mode = #tpu.pipeline_mode<synchronous>, transform_indices = @transform_4, window_bounds = array<i64: 1, 2>}, {transform_indices = @transform_5, window_bounds = array<i64: 8, 2>}]} {
    %c0 = arith.constant 0 : index
    %c0_0 = arith.constant 0 : index
    %0 = vector.load %arg1[%c0, %c0_0] : memref<8x128xf32, #tpu.memory_space<vmem>>, vector<8x128xf32>
    %c0_1 = arith.constant 0 : index
    %c0_2 = arith.constant 0 : index
    %1 = vector.load %arg2[%c0_1, %c0_2] : memref<128x128xf32, #tpu.memory_space<vmem>>, vector<128x128xf32>
    %cst = arith.constant dense<0.000000e+00> : vector<8x128xf32>
    %2 = tpu.matmul %0, %1, %cst {dimension_numbers = #tpu.dot_dimension_numbers<[1], [0], [0], [1], [0, 0, 1, 1], [], []>} : vector<8x128xf32>, vector<128x128xf32>, vector<8x128xf32> -> vector<8x128xf32>
    %c0_3 = arith.constant 0 : index
    %c0_4 = arith.constant 0 : index
    %3 = vector.load %arg3[%c0_3, %c0_4] : memref<1x128xf32, #tpu.memory_space<vmem>>, vector<1x128xf32>
    %4 = vector.broadcast %3 : vector<1x128xf32> to vector<8x128xf32>
    %5 = arith.addf %2, %4 : vector<8x128xf32>
    %6 = math.tanh %5 : vector<8x128xf32>
    %c0_5 = arith.constant 0 : index
    %c0_6 = arith.constant 0 : index
    %7 = vector.load %arg4[%c0_5, %c0_6] : memref<128x2xf32, #tpu.memory_space<vmem>>, vector<128x2xf32>
    %cst_7 = arith.constant dense<0.000000e+00> : vector<8x2xf32>
    %8 = tpu.matmul %6, %7, %cst_7 {dimension_numbers = #tpu.dot_dimension_numbers<[1], [0], [0], [1], [0, 0, 1, 1], [], []>} : vector<8x128xf32>, vector<128x2xf32>, vector<8x2xf32> -> vector<8x2xf32>
    %c0_8 = arith.constant 0 : index
    %c0_9 = arith.constant 0 : index
    %9 = vector.load %arg5[%c0_8, %c0_9] : memref<1x2xf32, #tpu.memory_space<vmem>>, vector<1x2xf32>
    %10 = vector.broadcast %9 : vector<1x2xf32> to vector<8x2xf32>
    %11 = arith.addf %8, %10 : vector<8x2xf32>
    %c0_10 = arith.constant 0 : index
    %c0_11 = arith.constant 0 : index
    %12 = vector.load %arg6[%c0_10, %c0_11] : memref<8x2xf32, #tpu.memory_space<vmem>>, vector<8x2xf32>
    tpu.vector_store %arg6[%c0_10, %c0_11], %11 {strides = array<i32>} : memref<8x2xf32, #tpu.memory_space<vmem>>, vector<8x2xf32>,
    return
  }
  func.func @transform_0(%arg0: i32) -> (i32, i32) {
    %c0_i32 = arith.constant 0 : i32
    %c0_i32_0 = arith.constant 0 : i32
    return %arg0, %c0_i32 : i32, i32
  }
  func.func @transform_1(%arg0: i32) -> (i32, i32) {
    %c0_i32 = arith.constant 0 : i32
    %c0_i32_0 = arith.constant 0 : i32
    %c0_i32_1 = arith.constant 0 : i32
    return %c0_i32, %c0_i32_0 : i32, i32
  }
  func.func @transform_2(%arg0: i32) -> (i32, i32) {
    %c0_i32 = arith.constant 0 : i32
    %c0_i32_0 = arith.constant 0 : i32
    %c0_i32_1 = arith.constant 0 : i32
    return %c0_i32, %c0_i32_0 : i32, i32
  }
  func.func @transform_3(%arg0: i32) -> (i32, i32) {
    %c0_i32 = arith.constant 0 : i32
    %c0_i32_0 = arith.constant 0 : i32
    %c0_i32_1 = arith.constant 0 : i32
    return %c0_i32, %c0_i32_0 : i32, i32
  }
  func.func @transform_4(%arg0: i32) -> (i32, i32) {
    %c0_i32 = arith.constant 0 : i32
    %c0_i32_0 = arith.constant 0 : i32
    %c0_i32_1 = arith.constant 0 : i32
    return %c0_i32, %c0_i32_0 : i32, i32
  }
  func.func @transform_5(%arg0: i32) -> (i32, i32) {
    %c0_i32 = arith.constant 0 : i32
    %c0_i32_0 = arith.constant 0 : i32
    return %arg0, %c0_i32 : i32, i32
  }
}

module attributes {stable_mosaic.version = 11 : i64} {
  func.func @_mlp_kernel_resident(%arg0: i32, %arg1: memref<8x128xf32, #tpu.memory_space<vmem>>, %arg2: memref<128x128xf32, #tpu.memory_space<vmem>>, %arg3: memref<1x128xf32, #tpu.memory_space<vmem>>, %arg4: memref<128x2xf32, #tpu.memory_space<vmem>>, %arg5: memref<1x2xf32, #tpu.memory_space<vmem>>, %arg6: memref<8x2xf32, #tpu.memory_space<vmem>>) attributes {dimension_semantics = [#tpu.dimension_semantics<parallel>], iteration_bounds = array<i64: 1>, scalar_prefetch = 0 : i64, scratch_operands = 0 : i64, tpu.core_type = #tpu.core_type<tc>, window_params = [{transform_indices = @transform_0, window_bounds = array<i64: 8, 128>}, {pipeline_mode = #tpu.pipeline_mode<synchronous>, transform_indices = @transform_1, window_bounds = array<i64: 128, 128>}, {pipeline_mode = #tpu.pipeline_mode<synchronous>, transform_indices = @transform_2, window_bounds = array<i64: 1, 128>}, {pipeline_mode = #tpu.pipeline_mode<synchronous>, transform_indices = @transform_3, window_bounds = array<i64: 128, 2>}, {pipeline_mode = #tpu.pipeline_mode<synchronous>, transform_indices = @transform_4, window_bounds = array<i64: 1, 2>}, {transform_indices = @transform_5, window_bounds = array<i64: 8, 2>}]} {
    %c0 = arith.constant 0 : index
    %c0_0 = arith.constant 0 : index
    %0 = vector.load %arg1[%c0, %c0_0] : memref<8x128xf32, #tpu.memory_space<vmem>>, vector<8x128xf32>
    %c0_1 = arith.constant 0 : index
    %c0_2 = arith.constant 0 : index
    %1 = vector.load %arg2[%c0_1, %c0_2] : memref<128x128xf32, #tpu.memory_space<vmem>>, vector<128x128xf32>
    %cst = arith.constant dense<0.000000e+00> : vector<8x128xf32>
    %2 = tpu.matmul %0, %1, %cst {dimension_numbers = #tpu.dot_dimension_numbers<[1], [0], [0], [1], [0, 0, 1, 1], [], []>} : vector<8x128xf32>, vector<128x128xf32>, vector<8x128xf32> -> vector<8x128xf32>
    %c0_3 = arith.constant 0 : index
    %c0_4 = arith.constant 0 : index
    %3 = vector.load %arg3[%c0_3, %c0_4] : memref<1x128xf32, #tpu.memory_space<vmem>>, vector<1x128xf32>
    %4 = vector.broadcast %3 : vector<1x128xf32> to vector<8x128xf32>
    %5 = arith.addf %2, %4 : vector<8x128xf32>
    %6 = math.tanh %5 : vector<8x128xf32>
    %c0_5 = arith.constant 0 : index
    %c0_6 = arith.constant 0 : index
    %7 = vector.load %arg4[%c0_5, %c0_6] : memref<128x2xf32, #tpu.memory_space<vmem>>, vector<128x2xf32>
    %cst_7 = arith.constant dense<0.000000e+00> : vector<8x2xf32>
    %8 = tpu.matmul %6, %7, %cst_7 {dimension_numbers = #tpu.dot_dimension_numbers<[1], [0], [0], [1], [0, 0, 1, 1], [], []>} : vector<8x128xf32>, vector<128x2xf32>, vector<8x2xf32> -> vector<8x2xf32>
    %c0_8 = arith.constant 0 : index
    %c0_9 = arith.constant 0 : index
    %9 = vector.load %arg5[%c0_8, %c0_9] : memref<1x2xf32, #tpu.memory_space<vmem>>, vector<1x2xf32>
    %10 = vector.broadcast %9 : vector<1x2xf32> to vector<8x2xf32>
    %11 = arith.addf %8, %10 : vector<8x2xf32>
    %c0_10 = arith.constant 0 : index
    %c0_11 = arith.constant 0 : index
    %12 = vector.load %arg6[%c0_10, %c0_11] : memref<8x2xf32, #tpu.memory_space<vmem>>, vector<8x2xf32>
    tpu.vector_store %arg6[%c0_10, %c0_11], %11 {strides = array<i32>} : memref<8x2xf32, #tpu.memory_space<vmem>>, vector<8x2xf32>,
    return
  }
  func.func @transform_0(%arg0: i32) -> (i32, i32) {
    %c0_i32 = arith.constant 0 : i32
    %c0_i32_0 = arith.constant 0 : i32
    return %arg0, %c0_i32 : i32, i32
  }
  func.func @transform_1(%arg0: i32) -> (i32, i32) {
    %c0_i32 = arith.constant 0 : i32
    %c0_i32_0 = arith.constant 0 : i32
    %c0_i32_1 = arith.constant 0 : i32
    return %c0_i32, %c0_i32_0 : i32, i32
  }
  func.func @transform_2(%arg0: i32) -> (i32, i32) {
    %c0_i32 = arith.constant 0 : i32
    %c0_i32_0 = arith.constant 0 : i32
    %c0_i32_1 = arith.constant 0 : i32
    return %c0_i32, %c0_i32_0 : i32, i32
  }
  func.func @transform_3(%arg0: i32) -> (i32, i32) {
    %c0_i32 = arith.constant 0 : i32
    %c0_i32_0 = arith.constant 0 : i32
    %c0_i32_1 = arith.constant 0 : i32
    return %c0_i32, %c0_i32_0 : i32, i32
  }
  func.func @transform_4(%arg0: i32) -> (i32, i32) {
    %c0_i32 = arith.constant 0 : i32
    %c0_i32_0 = arith.constant 0 : i32
    %c0_i32_1 = arith.constant 0 : i32
    return %c0_i32, %c0_i32_0 : i32, i32
  }
  func.func @transform_5(%arg0: i32) -> (i32, i32) {
    %c0_i32 = arith.constant 0 : i32
    %c0_i32_0 = arith.constant 0 : i32
    return %arg0, %c0_i32 : i32, i32
  }
}

</mosaic_0001>

<bundles_post_ra>
// kernel: tpu_custom_call.1
= control target key start
LH: loop header
LB: loop body
LE: loop exit
PB: predicated region body
PF: predicated region fallthrough
CT: control target
= control target key end

     0   :  { %10 = vsyncpa [#allocation3], 0  ;;  %s411_s18 = smov [#allocation2]   ;;  %s578_s0 = inlined_call_operand.hbm [shape: f32[8,128], index: 0, kind: input, shape index: {}]   ;;  %s579_s1 = inlined_call_operand.vmem [shape: f32[128,128], index: 1, kind: input, shape index: {}]   ;;  %s580_s2 = inlined_call_operand.vmem [shape: f32[1,128], index: 2, kind: input, shape index: {}]   ;;  %s581_s3 = inlined_call_operand.vmem [shape: f32[128,2], index: 3, kind: input, shape index: {}]   ;;  %s582_s4 = inlined_call_operand.vmem [shape: f32[1,2], index: 4, kind: input, shape index: {}]   ;;  %s583_s5 = inlined_call_operand.vmem [shape: f32[8,2], index: 5, kind: output, shape index: {}]  }
   0x1   :  { %s17_s19 = sshll.u32 %s411_s18, 4  ;;  %s387_s22 = scalar_lea.hbm %s578_s0, 128  ;;  %s18_s19 = int_to_ptr.vmem [resolvable:$true] %s17_s19 }
   0x2   :  { %p388_p0 = scmp.ne.s32.totalorder %s578_s0, %s387_s22  ;;  %p391_p1 = scmp.lt.u32.totalorder %s387_s22, %s578_s0 }
   0x4   :  { %p393_p2 = pnand %p391_p1, %p388_p0 }
   0x6   :  { %396 = shalt.err (!%p393_p2)
}
   0x7   :  { %s397_s27 = scalar_lea.vmem %s18_s19, 128  ;;  %p402_p4 = scmp.lt.s32.totalorder %s18_s19, %s18_s19 }
   0x8   :  { %p398_p3 = scmp.ne.s32.totalorder %s18_s19, %s397_s27  ;;  %p403_p5 = scmp.lt.s32.totalorder %s397_s27, %s397_s27 }
   0xa   :  { %p404_p6 = por %p403_p5, %p402_p4 }
   0xc   :  { %p405_p7 = pnand %p404_p6, %p398_p3 }
   0xe   :  { %408 = shalt.err (!%p405_p7)
}
   0xf   :  { %20 = dma.hbm_to_vmem [thread:$0]  %s578_s0, 128, %s18_s19, [#allocation3]  }
  0x10   :  { %409 = dma.done.wait [#allocation3], 128  }
  0x11   :  { %410 = vsyncadd [#allocation3], 4294967168  ;;  %v412_v0 = vmov 0.0|0.0   ;;  %vm413_vm0 = vmmov 0   ;;  %v414_v1 = vmov 0.0   ;;  %v33_v2 = vld [vmem:[%s579_s1] sm:$0xff] }
  0x12   :  { %333 = vmatprep.subr.bf16.mxu0 %v412_v0  ;;  %295 = vmatprep.mubr.msk.f32.mxu0 %vm413_vm0, %v414_v1  ;;  %v34_v3 = vld [vmem:[%s579_s1 + $0x8] sm:$0xff]  ;;  %v35_v4 = vld [vmem:[%s579_s1 + $0x10] sm:$0xff]  ;;  %v36_v6 = vld [vmem:[%s579_s1 + $0x18] sm:$0xff]  ;;  %vm220_vm1 = vcmask 15360  }
  0x13   :  { %357 = vmatprep.subr.bf16.mxu1 %v412_v0  ;;  %330 = vmatprep.mubr.msk.f32.mxu1 %vm413_vm0, %v414_v1  ;;  %v334_v5 = vpack.c.bf16 %v34_v3, %v33_v2  ;;  %v337_v7 = vpack.c.bf16 %v36_v6, %v35_v4  ;;  %v37_v8 = vld [vmem:[%s579_s1 + $0x20] sm:$0xff]  ;;  %v38_v9 = vld [vmem:[%s579_s1 + $0x28] sm:$0xff]  ;;  %v129_v12 = vld [vmem:[%s581_s3 + $0x10] sm:$0xff] }
  0x14   :  { %v127_v10 = vld [vmem:[%s581_s3] sm:$0xff]  ;;  %v128_v11 = vld [vmem:[%s581_s3 + $0x8] sm:$0xff]  ;;  %v130_v13 = vld [vmem:[%s581_s3 + $0x18] sm:$0xff]  ;;  %v340_v14 = vpack.c.bf16 %v38_v9, %v37_v8 }
  0x15   :  { %335 = vmatpush3.bf16.msra.mxu0 %v334_v5  ;;  %v358_v15 = vpack.c.bf16 %v128_v11, %v127_v10  ;;  %v39_v16 = vld [vmem:[%s579_s1 + $0x30] sm:$0xff]  ;;  %v40_v17 = vld [vmem:[%s579_s1 + $0x38] sm:$0xff]  ;;  %v361_v18 = vpack.c.bf16 %v130_v13, %v129_v12  ;;  %v131_v19 = vld [vmem:[%s581_s3 + $0x20] sm:$0xff] }
  0x16   :  { %336 = vmatprep.subr.bf16.mxu0 %v412_v0  ;;  %v132_v20 = vld [vmem:[%s581_s3 + $0x28] sm:$0xff]  ;;  %v343_v21 = vpack.c.bf16 %v40_v17, %v39_v16  ;;  %v41_v22 = vld [vmem:[%s579_s1 + $0x40] sm:$0xff]  ;;  %v133_v25 = vld [vmem:[%s581_s3 + $0x30] sm:$0xff] }
  0x17   :  { %359 = vmatpush3.bf16.msra.mxu1 %v358_v15  ;;  %v42_v23 = vld [vmem:[%s579_s1 + $0x48] sm:$0xff]  ;;  %v364_v24 = vpack.c.bf16 %v132_v20, %v131_v19  ;;  %v134_v26 = vld [vmem:[%s581_s3 + $0x38] sm:$0xff]  ;;  %v43_v28 = vld [vmem:[%s579_s1 + $0x50] sm:$0xff] }
  0x18   :  { %360 = vmatprep.subr.bf16.mxu1 %v412_v0  ;;  %v346_v27 = vpack.c.bf16 %v42_v23, %v41_v22  ;;  %v44_v29 = vld [vmem:[%s579_s1 + $0x58] sm:$0xff]  ;;  %v367_v30 = vpack.c.bf16 %v134_v26, %v133_v25  ;;  %v135_v31 = vld [vmem:[%s581_s3 + $0x40] sm:$0xff]  ;;  %v136_v32 = vld [vmem:[%s581_s3 + $0x48] sm:$0xff] }
  0x19   :  { %338 = vmatpush3.bf16.msra.mxu0 %v337_v7  ;;  %v349_v33 = vpack.c.bf16 %v44_v29, %v43_v28  ;;  %v45_v34 = vld [vmem:[%s579_s1 + $0x60] sm:$0xff]  ;;  %v46_v35 = vld [vmem:[%s579_s1 + $0x68] sm:$0xff]  ;;  %v370_v36 = vpack.c.bf16 %v136_v32, %v135_v31  ;;  %v47_v38 = vld [vmem:[%s579_s1 + $0x70] sm:$0xff] }
  0x1a   :  { %339 = vmatprep.subr.bf16.mxu0 %v412_v0  ;;  %v352_v37 = vpack.c.bf16 %v46_v35, %v45_v34  ;;  %v48_v39 = vld [vmem:[%s579_s1 + $0x78] sm:$0xff]  ;;  %v32_v41 = vld [vmem:[#allocation2] sm:$0xff]  ;;  %v137_v42 = vld [vmem:[%s581_s3 + $0x50] sm:$0xff] }
  0x1b   :  { %362 = vmatpush3.bf16.msra.mxu1 %v361_v18  ;;  %v355_v40 = vpack.c.bf16 %v48_v39, %v47_v38  ;;  %v138_v43 = vld [vmem:[%s581_s3 + $0x58] sm:$0xff]  ;;  %v139_v45 = vld [vmem:[%s581_s3 + $0x60] sm:$0xff]  ;;  %v140_v46 = vld [vmem:[%s581_s3 + $0x68] sm:$0xff] }
  0x1c   :  { %363 = vmatprep.subr.bf16.mxu1 %v412_v0  ;;  %v373_v44 = vpack.c.bf16 %v138_v43, %v137_v42  ;;  %v376_v47 = vpack.c.bf16 %v140_v46, %v139_v45  ;;  %v141_v48 = vld [vmem:[%s581_s3 + $0x70] sm:$0xff]  ;;  %v142_v49 = vld [vmem:[%s581_s3 + $0x78] sm:$0xff]  ;;  %v227_v51 = vld [vmem:[%s580_s2] ss:$0 sm:$0xff] }
  0x1d   :  { %341 = vmatpush3.bf16.msra.mxu0 %v340_v14  ;;  %v379_v50 = vpack.c.bf16 %v142_v49, %v141_v48  ;;  %v228_v56 = vld [vmem:[%s582_s4] ss:$0 sm:$0xff] }
  0x1e   :  { %342 = vmatprep.subr.bf16.mxu0 %v412_v0 }
  0x1f   :  { %365 = vmatpush3.bf16.msra.mxu1 %v364_v24 }
  0x20   :  { %366 = vmatprep.subr.bf16.mxu1 %v412_v0 }
  0x21   :  { %344 = vmatpush3.bf16.msra.mxu0 %v343_v21 }
  0x22   :  { %345 = vmatprep.subr.bf16.mxu0 %v412_v0 }
  0x23   :  { %368 = vmatpush3.bf16.msra.mxu1 %v367_v30 }
  0x24   :  { %369 = vmatprep.subr.bf16.mxu1 %v412_v0 }
  0x25   :  { %347 = vmatpush3.bf16.msra.mxu0 %v346_v27 }
  0x26   :  { %348 = vmatprep.subr.bf16.mxu0 %v412_v0 }
  0x27   :  { %371 = vmatpush3.bf16.msra.mxu1 %v370_v36 }
  0x28   :  { %372 = vmatprep.subr.bf16.mxu1 %v412_v0 }
  0x29   :  { %350 = vmatpush3.bf16.msra.mxu0 %v349_v33 }
  0x2a   :  { %351 = vmatprep.subr.bf16.mxu0 %v412_v0 }
  0x2b   :  { %374 = vmatpush3.bf16.msra.mxu1 %v373_v44 }
  0x2c   :  { %375 = vmatprep.subr.bf16.mxu1 %v412_v0 }
  0x2d   :  { %353 = vmatpush3.bf16.msra.mxu0 %v352_v37 }
  0x2e   :  { %354 = vmatprep.subr.bf16.mxu0 %v412_v0 }
  0x2f   :  { %377 = vmatpush3.bf16.msra.mxu1 %v376_v47 }
  0x30   :  { %378 = vmatprep.subr.bf16.mxu1 %v412_v0 }
  0x31   :  { %356 = vmatpush3.bf16.msra.mxu0 %v355_v40 }
  0x33   :  { %380 = vmatpush3.bf16.msra.mxu1 %v379_v50 }
  0x34   :  { %296 = vmatmul.mubr.f32.vlgmr.msra.gmra.mrb[0].mxu0 %v32_v41 }
 0x107   :  { %v122_v52 = vpop.f32.mrb[0].mxu0 }
 0x108   :  { %v123_v53 = vadd.f32 %v227_v51, %v122_v52  ;;  %v297_v54 = vpop.f32.mrb[1].mxu0 }
 0x10a   :  { %385 = vtanh.f32 %v123_v53 }
 0x114   :  { %v386_v55 = vpop.eup %385 }
 0x115   :  { %331 = vmatmul.mubr.f32.vlgmr.msra.gmra.mrb[0].mxu1 %v386_v55 }
 0x1e8   :  { %v216_v57 = vpop.f32.mrb[0].mxu1 }
 0x1e9   :  { %v217_v58 = vadd.f32 %v228_v56, %v216_v57  ;;  %v332_v59 = vpop.f32.mrb[1].mxu1 }
 0x1eb   :  { %221 = vst.msk [vmem:[%s583_s5] sm:$0xff] %vm220_vm1, %v217_v58 }
 0x1ec   :  { %226 = vsyncpa [#allocation3], 1 }

// kernel: tpu_custom_call.1
= control target key start
LH: loop header
LB: loop body
LE: loop exit
PB: predicated region body
PF: predicated region fallthrough
CT: control target
= control target key end

     0   :  { %10 = vsyncpa [#allocation3], 0  ;;  %s411_s18 = smov [#allocation2]   ;;  %s578_s0 = inlined_call_operand.hbm [shape: f32[8,128], index: 0, kind: input, shape index: {}]   ;;  %s579_s1 = inlined_call_operand.vmem [shape: f32[128,128], index: 1, kind: input, shape index: {}]   ;;  %s580_s2 = inlined_call_operand.vmem [shape: f32[1,128], index: 2, kind: input, shape index: {}]   ;;  %s581_s3 = inlined_call_operand.vmem [shape: f32[128,2], index: 3, kind: input, shape index: {}]   ;;  %s582_s4 = inlined_call_operand.vmem [shape: f32[1,2], index: 4, kind: input, shape index: {}]   ;;  %s583_s5 = inlined_call_operand.vmem [shape: f32[8,2], index: 5, kind: output, shape index: {}]  }
   0x1   :  { %s17_s19 = sshll.u32 %s411_s18, 4  ;;  %s387_s22 = scalar_lea.hbm %s578_s0, 128  ;;  %s18_s19 = int_to_ptr.vmem [resolvable:$true] %s17_s19 }
   0x2   :  { %p388_p0 = scmp.ne.s32.totalorder %s578_s0, %s387_s22  ;;  %p391_p1 = scmp.lt.u32.totalorder %s387_s22, %s578_s0 }
   0x4   :  { %p393_p2 = pnand %p391_p1, %p388_p0 }
   0x6   :  { %396 = shalt.err (!%p393_p2)
}
   0x7   :  { %s397_s27 = scalar_lea.vmem %s18_s19, 128  ;;  %p402_p4 = scmp.lt.s32.totalorder %s18_s19, %s18_s19 }
   0x8   :  { %p398_p3 = scmp.ne.s32.totalorder %s18_s19, %s397_s27  ;;  %p403_p5 = scmp.lt.s32.totalorder %s397_s27, %s397_s27 }
   0xa   :  { %p404_p6 = por %p403_p5, %p402_p4 }
   0xc   :  { %p405_p7 = pnand %p404_p6, %p398_p3 }
   0xe   :  { %408 = shalt.err (!%p405_p7)
}
   0xf   :  { %20 = dma.hbm_to_vmem [thread:$0]  %s578_s0, 128, %s18_s19, [#allocation3]  }
  0x10   :  { %409 = dma.done.wait [#allocation3], 128  }
  0x11   :  { %410 = vsyncadd [#allocation3], 4294967168  ;;  %v412_v0 = vmov 0.0|0.0   ;;  %vm413_vm0 = vmmov 0   ;;  %v414_v1 = vmov 0.0   ;;  %v33_v2 = vld [vmem:[%s579_s1] sm:$0xff] }
  0x12   :  { %333 = vmatprep.subr.bf16.mxu0 %v412_v0  ;;  %295 = vmatprep.mubr.msk.f32.mxu0 %vm413_vm0, %v414_v1  ;;  %v34_v3 = vld [vmem:[%s579_s1 + $0x8] sm:$0xff]  ;;  %v35_v4 = vld [vmem:[%s579_s1 + $0x10] sm:$0xff]  ;;  %v36_v6 = vld [vmem:[%s579_s1 + $0x18] sm:$0xff]  ;;  %vm220_vm1 = vcmask 15360  }
  0x13   :  { %357 = vmatprep.subr.bf16.mxu1 %v412_v0  ;;  %330 = vmatprep.mubr.msk.f32.mxu1 %vm413_vm0, %v414_v1  ;;  %v334_v5 = vpack.c.bf16 %v34_v3, %v33_v2  ;;  %v337_v7 = vpack.c.bf16 %v36_v6, %v35_v4  ;;  %v37_v8 = vld [vmem:[%s579_s1 + $0x20] sm:$0xff]  ;;  %v38_v9 = vld [vmem:[%s579_s1 + $0x28] sm:$0xff]  ;;  %v129_v12 = vld [vmem:[%s581_s3 + $0x10] sm:$0xff] }
  0x14   :  { %v127_v10 = vld [vmem:[%s581_s3] sm:$0xff]  ;;  %v128_v11 = vld [vmem:[%s581_s3 + $0x8] sm:$0xff]  ;;  %v130_v13 = vld [vmem:[%s581_s3 + $0x18] sm:$0xff]  ;;  %v340_v14 = vpack.c.bf16 %v38_v9, %v37_v8 }
  0x15   :  { %335 = vmatpush3.bf16.msra.mxu0 %v334_v5  ;;  %v358_v15 = vpack.c.bf16 %v128_v11, %v127_v10  ;;  %v39_v16 = vld [vmem:[%s579_s1 + $0x30] sm:$0xff]  ;;  %v40_v17 = vld [vmem:[%s579_s1 + $0x38] sm:$0xff]  ;;  %v361_v18 = vpack.c.bf16 %v130_v13, %v129_v12  ;;  %v131_v19 = vld [vmem:[%s581_s3 + $0x20] sm:$0xff] }
  0x16   :  { %336 = vmatprep.subr.bf16.mxu0 %v412_v0  ;;  %v132_v20 = vld [vmem:[%s581_s3 + $0x28] sm:$0xff]  ;;  %v343_v21 = vpack.c.bf16 %v40_v17, %v39_v16  ;;  %v41_v22 = vld [vmem:[%s579_s1 + $0x40] sm:$0xff]  ;;  %v133_v25 = vld [vmem:[%s581_s3 + $0x30] sm:$0xff] }
  0x17   :  { %359 = vmatpush3.bf16.msra.mxu1 %v358_v15  ;;  %v42_v23 = vld [vmem:[%s579_s1 + $0x48] sm:$0xff]  ;;  %v364_v24 = vpack.c.bf16 %v132_v20, %v131_v19  ;;  %v134_v26 = vld [vmem:[%s581_s3 + $0x38] sm:$0xff]  ;;  %v43_v28 = vld [vmem:[%s579_s1 + $0x50] sm:$0xff] }
  0x18   :  { %360 = vmatprep.subr.bf16.mxu1 %v412_v0  ;;  %v346_v27 = vpack.c.bf16 %v42_v23, %v41_v22  ;;  %v44_v29 = vld [vmem:[%s579_s1 + $0x58] sm:$0xff]  ;;  %v367_v30 = vpack.c.bf16 %v134_v26, %v133_v25  ;;  %v135_v31 = vld [vmem:[%s581_s3 + $0x40] sm:$0xff]  ;;  %v136_v32 = vld [vmem:[%s581_s3 + $0x48] sm:$0xff] }
  0x19   :  { %338 = vmatpush3.bf16.msra.mxu0 %v337_v7  ;;  %v349_v33 = vpack.c.bf16 %v44_v29, %v43_v28  ;;  %v45_v34 = vld [vmem:[%s579_s1 + $0x60] sm:$0xff]  ;;  %v46_v35 = vld [vmem:[%s579_s1 + $0x68] sm:$0xff]  ;;  %v370_v36 = vpack.c.bf16 %v136_v32, %v135_v31  ;;  %v47_v38 = vld [vmem:[%s579_s1 + $0x70] sm:$0xff] }
  0x1a   :  { %339 = vmatprep.subr.bf16.mxu0 %v412_v0  ;;  %v352_v37 = vpack.c.bf16 %v46_v35, %v45_v34  ;;  %v48_v39 = vld [vmem:[%s579_s1 + $0x78] sm:$0xff]  ;;  %v32_v41 = vld [vmem:[#allocation2] sm:$0xff]  ;;  %v137_v42 = vld [vmem:[%s581_s3 + $0x50] sm:$0xff] }
  0x1b   :  { %362 = vmatpush3.bf16.msra.mxu1 %v361_v18  ;;  %v355_v40 = vpack.c.bf16 %v48_v39, %v47_v38  ;;  %v138_v43 = vld [vmem:[%s581_s3 + $0x58] sm:$0xff]  ;;  %v139_v45 = vld [vmem:[%s581_s3 + $0x60] sm:$0xff]  ;;  %v140_v46 = vld [vmem:[%s581_s3 + $0x68] sm:$0xff] }
  0x1c   :  { %363 = vmatprep.subr.bf16.mxu1 %v412_v0  ;;  %v373_v44 = vpack.c.bf16 %v138_v43, %v137_v42  ;;  %v376_v47 = vpack.c.bf16 %v140_v46, %v139_v45  ;;  %v141_v48 = vld [vmem:[%s581_s3 + $0x70] sm:$0xff]  ;;  %v142_v49 = vld [vmem:[%s581_s3 + $0x78] sm:$0xff]  ;;  %v227_v51 = vld [vmem:[%s580_s2] ss:$0 sm:$0xff] }
  0x1d   :  { %341 = vmatpush3.bf16.msra.mxu0 %v340_v14  ;;  %v379_v50 = vpack.c.bf16 %v142_v49, %v141_v48  ;;  %v228_v56 = vld [vmem:[%s582_s4] ss:$0 sm:$0xff] }
  0x1e   :  { %342 = vmatprep.subr.bf16.mxu0 %v412_v0 }
  0x1f   :  { %365 = vmatpush3.bf16.msra.mxu1 %v364_v24 }
  0x20   :  { %366 = vmatprep.subr.bf16.mxu1 %v412_v0 }
  0x21   :  { %344 = vmatpush3.bf16.msra.mxu0 %v343_v21 }
  0x22   :  { %345 = vmatprep.subr.bf16.mxu0 %v412_v0 }
  0x23   :  { %368 = vmatpush3.bf16.msra.mxu1 %v367_v30 }
  0x24   :  { %369 = vmatprep.subr.bf16.mxu1 %v412_v0 }
  0x25   :  { %347 = vmatpush3.bf16.msra.mxu0 %v346_v27 }
  0x26   :  { %348 = vmatprep.subr.bf16.mxu0 %v412_v0 }
  0x27   :  { %371 = vmatpush3.bf16.msra.mxu1 %v370_v36 }
  0x28   :  { %372 = vmatprep.subr.bf16.mxu1 %v412_v0 }
  0x29   :  { %350 = vmatpush3.bf16.msra.mxu0 %v349_v33 }
  0x2a   :  { %351 = vmatprep.subr.bf16.mxu0 %v412_v0 }
  0x2b   :  { %374 = vmatpush3.bf16.msra.mxu1 %v373_v44 }
  0x2c   :  { %375 = vmatprep.subr.bf16.mxu1 %v412_v0 }
  0x2d   :  { %353 = vmatpush3.bf16.msra.mxu0 %v352_v37 }
  0x2e   :  { %354 = vmatprep.subr.bf16.mxu0 %v412_v0 }
  0x2f   :  { %377 = vmatpush3.bf16.msra.mxu1 %v376_v47 }
  0x30   :  { %378 = vmatprep.subr.bf16.mxu1 %v412_v0 }
  0x31   :  { %356 = vmatpush3.bf16.msra.mxu0 %v355_v40 }
  0x33   :  { %380 = vmatpush3.bf16.msra.mxu1 %v379_v50 }
  0x34   :  { %296 = vmatmul.mubr.f32.vlgmr.msra.gmra.mrb[0].mxu0 %v32_v41 }
 0x107   :  { %v122_v52 = vpop.f32.mrb[0].mxu0 }
 0x108   :  { %v123_v53 = vadd.f32 %v227_v51, %v122_v52  ;;  %v297_v54 = vpop.f32.mrb[1].mxu0 }
 0x10a   :  { %385 = vtanh.f32 %v123_v53 }
 0x114   :  { %v386_v55 = vpop.eup %385 }
 0x115   :  { %331 = vmatmul.mubr.f32.vlgmr.msra.gmra.mrb[0].mxu1 %v386_v55 }
 0x1e8   :  { %v216_v57 = vpop.f32.mrb[0].mxu1 }
 0x1e9   :  { %v217_v58 = vadd.f32 %v228_v56, %v216_v57  ;;  %v332_v59 = vpop.f32.mrb[1].mxu1 }
 0x1eb   :  { %221 = vst.msk [vmem:[%s583_s5] sm:$0xff] %vm220_vm1, %v217_v58 }
 0x1ec   :  { %226 = vsyncpa [#allocation3], 1 }

</bundles_post_ra>
